<compile_context>
chip_gen: v6e
topology: v6e:2x2x1
jax: 0.10.0
libtpu: 0.0.40
codegen_flags: <defaults>
</compile_context>

<pallas_src>
import functools

import jax
import jax.numpy as jnp
import numpy as np
from jax.experimental import pallas as pl
from jax.experimental.pallas import tpu as pltpu


def _round_up(n, m):
    return ((n + m - 1) // m) * m


def _cdiv(a, b):
    return -(-a // b)


def _dynamic_fc_kernel(x_ref, w_ref, o_ref, *, degree, knots, act, islastlayer, k_pad):
    x = x_ref[...]            # (TB, 1+ind) f32
    t = x[:, 0:1]             # (TB, 1)     treatment column (lane 0)

    # Truncated power basis via running products (VPU-only, no pow/EUP).
    basis_cols = [jnp.ones_like(t)]
    p = t
    for _ in range(1, degree + 1):
        basis_cols.append(p)
        p = p * t
    for knot in knots:
        r = jnp.maximum(t - knot, 0.0)
        term = r
        for _ in range(degree - 1):
            term = term * r
        basis_cols.append(term)
    d = len(basis_cols)

    # Fused Z = [x*b0 | x*b1 | ... | x*b_{d-1} | b0..b_{d-1} | zero-pad]  -> (TB, Kp)
    # The t column inside each x*b_k segment is neutralized by zero rows in w_ref, so no
    # in-kernel feature slice is needed.
    pieces = [x * basis_cols[k] for k in range(d)]
    pieces.append(jnp.concatenate(basis_cols, axis=1))
    if k_pad:
        pieces.append(jnp.zeros((x.shape[0], k_pad), x.dtype))
    z = jnp.concatenate(pieces, axis=1).astype(w_ref.dtype)

    # Single MXU matmul with the bias folded into the contraction (f32 accumulation).
    out = jnp.dot(z, w_ref[...], preferred_element_type=jnp.float32)   # (TB, outd)

    if act == 'relu':
        out = jnp.maximum(out, 0.0)
    elif act == 'tanh':
        out = jnp.tanh(out)
    elif act == 'sigmoid':
        out = jax.nn.sigmoid(out)

    if islastlayer:
        o_ref[...] = out.astype(o_ref.dtype)
    else:
        # Fuse the treatment-column prepend into the output tile (lane-tight (TB, 1+outd)).
        o_ref[...] = jnp.concatenate([t, out], axis=1).astype(o_ref.dtype)


def prepare_dynamic_fc_params(weight, bias, *, isbias=1, mxu_dtype=jnp.bfloat16):
    """One-time parameter transform (hoisted out of the forward pass).

    weight: (ind, outd, d), bias: (outd, d) or None.
    Returns fused weight of shape (Kp, outd) with K = d*(1+ind) + d, Kp = round_up(K, 8):
      rows [k*(1+ind) : (k+1)*(1+ind)] = [0 ; weight[:, :, k]]   (row 0 kills the t column)
      next d rows                      = bias.T
      remaining Kp-K rows              = 0
    """
    ind, outd, d = weight.shape
    w_seg = jnp.concatenate(
        [jnp.zeros((d, 1, outd), jnp.float32),
         jnp.transpose(weight, (2, 0, 1)).astype(jnp.float32)], axis=1)   # (d, 1+ind, outd)
    w_seg = w_seg.reshape(d * (1 + ind), outd)
    if isbias and bias is not None:
        w_b = jnp.transpose(bias, (1, 0)).astype(jnp.float32)             # (d, outd)
    else:
        w_b = jnp.zeros((d, outd), jnp.float32)
    w_fused = jnp.concatenate([w_seg, w_b], axis=0)                       # (K, outd)
    K = w_fused.shape[0]
    Kp = _round_up(K, 8)
    if Kp != K:
        w_fused = jnp.pad(w_fused, ((0, Kp - K), (0, 0)))
    return w_fused.astype(mxu_dtype)


def dynamic_fc(x, w_fused, *, outd, degree, knots, act='relu', islastlayer=0, tb=None):
    """x: (B, 1+ind); w_fused: output of prepare_dynamic_fc_params."""
    assert degree >= 2, "degree == 1 has a knot-indexing quirk in the reference; unsupported"
    B, C = x.shape
    ind = C - 1
    d = degree + 1 + len(knots)
    K = d * (1 + ind) + d
    Kp, w_outd = w_fused.shape
    assert w_outd == outd and Kp >= K and Kp % 8 == 0, "fused weight shape mismatch"
    k_pad = Kp - K

    x = x.astype(jnp.float32)

    # Batch tile: as large as reasonable (up to 2048) while minimizing padding, multiple of 8,
    # and capped so the grid has >= 2 steps (lets the parallel axis use both TCs on v7x).
    if tb is None:
        n_tiles = max(1, _cdiv(B, 2048))
        tb = _round_up(_cdiv(B, n_tiles), 8)
        tb = min(tb, max(8, _round_up(_cdiv(B, 2), 8)))
    tb = max(8, _round_up(tb, 8))
    Bp = _round_up(B, tb)
    if Bp != B:
        # Padded rows give t=0 -> basis=[1,0,...] -> nonzero garbage rows; harmless because
        # they are sliced off below (do not reduce over padded rows in future changes).
        x = jnp.pad(x, ((0, Bp - B), (0, 0)))

    no = outd if islastlayer else 1 + outd
    kernel = functools.partial(
        _dynamic_fc_kernel, degree=degree,
        knots=tuple(float(k) for k in knots), act=act,
        islastlayer=bool(islastlayer), k_pad=k_pad)

    out = pl.pallas_call(
        kernel,
        out_shape=jax.ShapeDtypeStruct((Bp, no), jnp.float32),
        grid=(Bp // tb,),
        in_specs=[
            pl.BlockSpec((tb, C), lambda i: (i, 0)),      # x (treatment + features), one stream
            pl.BlockSpec((Kp, outd), lambda i: (0, 0)),   # fused weight, VMEM-resident
        ],
        out_specs=pl.BlockSpec((tb, no), lambda i: (i, 0)),  # lane-tight output incl. t column
        compiler_params=pltpu.CompilerParams(
            dimension_semantics=("parallel",),
            vmem_limit_bytes=32 * 1024 * 1024),           # v7x-safe (64 MiB physical per TC)
    )(x, w_fused)

    if Bp != B:
        out = out[:B]
    return out


def _reference(x, weight, bias, degree, knots, isbias, islastlayer):
    """Pure-jnp mirror of the PyTorch forward for correctness checking."""
    t = x[:, 0]
    feat = x[:, 1:]
    d = degree + 1 + len(knots)
    cols = []
    for k in range(d):
        if k == 0:
            cols.append(jnp.ones_like(t))
        elif k <= degree:
            cols.append(t ** k)
        else:
            cols.append(jnp.maximum(t - knots[k - degree - 1], 0.0) ** degree)
    basis = jnp.stack(cols, axis=1)                       # (B, d)
    xfw = jnp.einsum('bi,iok->bok', feat, weight)         # (B, outd, d)
    out = jnp.sum(xfw * basis[:, None, :], axis=2)        # (B, outd)
    if isbias:
        out = out + basis @ bias.T
    out = jnp.maximum(out, 0.0)                           # relu
    if not islastlayer:
        out = jnp.concatenate([t[:, None], out], axis=1)
    return out


if __name__ == "__main__":
    # Module hyperparameters (degree >= 2 so the knot branch is well-defined).
    ind, outd = 16, 32
    degree = 2
    knots = [1.0 / 3.0, 2.0 / 3.0]
    d = degree + 1 + len(knots)                           # = 5
    B = 13                                                # non-multiple of 8: exercises padding

    key = jax.random.PRNGKey(0)
    k_x, k_t, k_w, k_b = jax.random.split(key, 4)

    # Inputs: treatment in [0,1] in column 0, features in columns 1:.
    t = jax.random.uniform(k_t, (B, 1), dtype=jnp.float32)
    feat = jax.random.uniform(k_x, (B, ind), dtype=jnp.float32)
    x = jnp.concatenate([t, feat], axis=1)                # (B, 1+ind)

    # Deterministic "torch.rand"-style parameter init (uniform [0,1)).
    weight = jax.random.uniform(k_w, (ind, outd, d), dtype=jnp.float32)
    bias = jax.random.uniform(k_b, (outd, d), dtype=jnp.float32)

    ref = _reference(x, weight, bias, degree, knots, isbias=1, islastlayer=0)
    ref_last = _reference(x, weight, bias, degree, knots, isbias=1, islastlayer=1)

    # --- f32 MXU operands (bit-faithful to the PyTorch module) ---
    w_f32 = prepare_dynamic_fc_params(weight, bias, isbias=1, mxu_dtype=jnp.float32)
    out = dynamic_fc(x, w_f32, outd=outd, degree=degree, knots=knots,
                     act='relu', islastlayer=0)
    out = jax.block_until_ready(out)
    assert out.shape == (B, 1 + outd)
    np.testing.assert_allclose(np.asarray(out), np.asarray(ref), rtol=1e-5, atol=1e-5)

    # last-layer variant (no treatment prepend)
    out_last = dynamic_fc(x, w_f32, outd=outd, degree=degree, knots=knots,
                          act='relu', islastlayer=1)
    out_last = jax.block_until_ready(out_last)
    assert out_last.shape == (B, outd)
    np.testing.assert_allclose(np.asarray(out_last), np.asarray(ref_last), rtol=1e-5, atol=1e-5)

    # --- bf16 MXU operands (f32 accumulation): the default fast path on v5e/v6e/v7x ---
    # Note: the basis/bias lanes are also bf16 in this path (documented tolerance).
    w_bf16 = prepare_dynamic_fc_params(weight, bias, isbias=1)   # default bf16
    out_bf16 = dynamic_fc(x, w_bf16, outd=outd, degree=degree, knots=knots,
                          act='relu', islastlayer=0)
    out_bf16 = jax.block_until_ready(out_bf16)
    np.testing.assert_allclose(np.asarray(out_bf16), np.asarray(ref), rtol=2e-2, atol=2e-2)

    print("KERNEL_OK")
</pallas_src>

<mosaic_0001>
module attributes {stable_mosaic.version = 11 : i64} {
  func.func @_dynamic_fc_kernel(%arg0: i32, %arg1: memref<8x17xf32, #tpu.memory_space<vmem>>, %arg2: memref<96x32xf32, #tpu.memory_space<vmem>>, %arg3: memref<8x33xf32, #tpu.memory_space<vmem>>) attributes {dimension_semantics = [#tpu.dimension_semantics<parallel>], iteration_bounds = array<i64: 2>, scalar_prefetch = 0 : i64, scratch_operands = 0 : i64, tpu.core_type = #tpu.core_type<tc>, window_params = [{transform_indices = @transform_0, window_bounds = array<i64: 8, 17>}, {pipeline_mode = #tpu.pipeline_mode<synchronous>, transform_indices = @transform_1, window_bounds = array<i64: 96, 32>}, {transform_indices = @transform_2, window_bounds = array<i64: 8, 33>}]} {
    %c0 = arith.constant 0 : index
    %c0_0 = arith.constant 0 : index
    %0 = vector.load %arg1[%c0, %c0_0] : memref<8x17xf32, #tpu.memory_space<vmem>>, vector<8x17xf32>
    %1 = vector.extract_strided_slice %0 {offsets = [0, 0], sizes = [8, 1], strides = [1, 1]} : vector<8x17xf32> to vector<8x1xf32>
    %cst = arith.constant 1.000000e+00 : f32
    %2 = vector.broadcast %cst : f32 to vector<8x1xf32>
    %3 = arith.mulf %1, %1 : vector<8x1xf32>
    %cst_1 = arith.constant 0.333333343 : f32
    %4 = vector.broadcast %cst_1 : f32 to vector<8x1xf32>
    %5 = arith.subf %1, %4 : vector<8x1xf32>
    %cst_2 = arith.constant 0.000000e+00 : f32
    %6 = vector.broadcast %cst_2 : f32 to vector<8x1xf32>
    %7 = arith.maximumf %5, %6 : vector<8x1xf32>
    %8 = arith.mulf %7, %7 : vector<8x1xf32>
    %cst_3 = arith.constant 0.666666686 : f32
    %9 = vector.broadcast %cst_3 : f32 to vector<8x1xf32>
    %10 = arith.subf %1, %9 : vector<8x1xf32>
    %cst_4 = arith.constant 0.000000e+00 : f32
    %11 = vector.broadcast %cst_4 : f32 to vector<8x1xf32>
    %12 = arith.maximumf %10, %11 : vector<8x1xf32>
    %13 = arith.mulf %12, %12 : vector<8x1xf32>
    %14 = vector.broadcast %2 : vector<8x1xf32> to vector<8x17xf32>
    %15 = arith.mulf %0, %14 : vector<8x17xf32>
    %16 = vector.broadcast %1 : vector<8x1xf32> to vector<8x17xf32>
    %17 = arith.mulf %0, %16 : vector<8x17xf32>
    %18 = vector.broadcast %3 : vector<8x1xf32> to vector<8x17xf32>
    %19 = arith.mulf %0, %18 : vector<8x17xf32>
    %20 = vector.broadcast %8 : vector<8x1xf32> to vector<8x17xf32>
    %21 = arith.mulf %0, %20 : vector<8x17xf32>
    %22 = vector.broadcast %13 : vector<8x1xf32> to vector<8x17xf32>
    %23 = arith.mulf %0, %22 : vector<8x17xf32>
    %24 = tpu.concatenate %2, %1, %3, %8, %13 in 1 : vector<8x1xf32>, vector<8x1xf32>, vector<8x1xf32>, vector<8x1xf32>, vector<8x1xf32> -> vector<8x5xf32>
    %cst_5 = arith.constant 0.000000e+00 : f32
    %25 = vector.broadcast %cst_5 : f32 to vector<8x6xf32>
    %26 = tpu.concatenate %15, %17, %19, %21, %23, %24, %25 in 1 : vector<8x17xf32>, vector<8x17xf32>, vector<8x17xf32>, vector<8x17xf32>, vector<8x17xf32>, vector<8x5xf32>, vector<8x6xf32> -> vector<8x96xf32>
    %c0_6 = arith.constant 0 : index
    %c0_7 = arith.constant 0 : index
    %27 = vector.load %arg2[%c0_6, %c0_7] : memref<96x32xf32, #tpu.memory_space<vmem>>, vector<96x32xf32>
    %cst_8 = arith.constant dense<0.000000e+00> : vector<8x32xf32>
    %28 = tpu.matmul %26, %27, %cst_8 {dimension_numbers = #tpu.dot_dimension_numbers<[1], [0], [0], [1], [0, 0, 1, 1], [], []>} : vector<8x96xf32>, vector<96x32xf32>, vector<8x32xf32> -> vector<8x32xf32>
    %cst_9 = arith.constant 0.000000e+00 : f32
    %29 = vector.broadcast %cst_9 : f32 to vector<8x32xf32>
    %30 = arith.maximumf %28, %29 : vector<8x32xf32>
    %31 = tpu.concatenate %1, %30 in 1 : vector<8x1xf32>, vector<8x32xf32> -> vector<8x33xf32>
    %c0_10 = arith.constant 0 : index
    %c0_11 = arith.constant 0 : index
    %32 = vector.load %arg3[%c0_10, %c0_11] : memref<8x33xf32, #tpu.memory_space<vmem>>, vector<8x33xf32>
    tpu.vector_store %arg3[%c0_10, %c0_11], %31 {strides = array<i32>} : memref<8x33xf32, #tpu.memory_space<vmem>>, vector<8x33xf32>,
    return
  }
  func.func @transform_0(%arg0: i32) -> (i32, i32) {
    %c0_i32 = arith.constant 0 : i32
    %c0_i32_0 = arith.constant 0 : i32
    return %arg0, %c0_i32 : i32, i32
  }
  func.func @transform_1(%arg0: i32) -> (i32, i32) {
    %c0_i32 = arith.constant 0 : i32
    %c0_i32_0 = arith.constant 0 : i32
    %c0_i32_1 = arith.constant 0 : i32
    return %c0_i32, %c0_i32_0 : i32, i32
  }
  func.func @transform_2(%arg0: i32) -> (i32, i32) {
    %c0_i32 = arith.constant 0 : i32
    %c0_i32_0 = arith.constant 0 : i32
    return %arg0, %c0_i32 : i32, i32
  }
}

</mosaic_0001>

<bundles_post_ra>
// kernel: tpu_custom_call.1
= control target key start
LH: loop header
LB: loop body
LE: loop exit
PB: predicated region body
PF: predicated region fallthrough
CT: control target
= control target key end

     0   :  { %7 = vsyncpa [#allocation3], 0  ;;  %s733_s0 = inlined_call_operand.vmem [shape: f32[16,17], index: 0, kind: input, shape index: {}]   ;;  %s734_s1 = inlined_call_operand.vmem [shape: f32[96,32], index: 1, kind: input, shape index: {}]   ;;  %s735_s2 = inlined_call_operand.hbm [shape: f32[16,33], index: 2, kind: output, shape index: {}]  }
   0x1   :  { %9 = vsyncpa [#allocation3 + $0x1], 0  ;;  %s586_s9 = smov 0   ;;  %s588_s10 = smov 0  }
   0x2   :  { %s590_s11 = smov 0   ;;  %s592_s12 = smov 0  }
   0x3 LB: > { %s607_s13 = sadd.s32 4294967295, %s556_s12   ;;  %s390_s14 = sadd.s32 4294967294, %s556_s12   ;;  %s556_s12 = sphi %s592_s12, %s741_s12   ;;  %s552_s11 = sphi %s590_s11, %s740_s11   ;;  %s548_s10 = sphi %s588_s10, %s739_s10   ;;  %s544_s9 = sphi %s586_s9, %s738_s9  }
   0x4   : > { %s611_s15 = sadd.s32 1, %s556_s12   ;;  %s69_s16 = sadd.s32 1, %s552_s11 }
   0x5   : > { %s66_s17 = ssub.s32 %s556_s12, %s611_s15  ;;  %p79_p0 = scmp.ne.s32.totalorder %s552_s11, %s548_s10 }
   0x6   : > { %p67_p1 = scmp.eq.s32.totalorder %s66_s17, 0  ;;  %p80_p2 = scmp.eq.s32.totalorder %s607_s13, 1 }
   0x7   : > { %p85_p3 = scmp.ne.s32.totalorder %s548_s10, %s544_s9  ;;  %p86_p4 = scmp.eq.s32.totalorder %s390_s14, 1 }
   0x8   : > { %s622_s18 = scalar_select %p67_p1, %s552_s11, %s69_s16  }
   0x9   : > { %p624_p5 = por %p80_p2, %p79_p0  ;;  %p628_p6 = por %p86_p4, %p85_p3 }
   0xa   : > { %p393_p7 = scmp.ge.s32.totalorder %s556_s12, 1  ;;  %p114_p8 = scmp.lt.s32.totalorder %s556_s12, 3 }
   0xc   : > { %p115_p9 = pnand %p393_p7, %p114_p8 }
   0xd   : > { %p135_p10 = scmp.lt.s32.totalorder (!%p115_p9), %s607_s13, 1  ;;  %s559_s26 = smov (!%p115_p9), 1  }
   0xe   : > { %118 = sbr.rel (%p115_p9) target bundleno = 608 (0x260), region = 28  ;;  %s560_s27 = smov (!%p115_p9), 3  }
   0xf   : > { %s561_s28 = smov (!%p115_p9), 2   ;;  %s563_s5 = smov (!%p115_p9), 4  }
  0x10   : > { %s564_s4 = smov (!%p115_p9), 17   ;;  %s566_s14 = smov (!%p115_p9), 51  }
  0x11   : > { %s567_s16 = smov (!%p115_p9), 34   ;;  %s568_s17 = smov (!%p115_p9), 68  }
  0x12   : > { %s400_s24 = sshll.u32 (!%p115_p9), %s607_s13, 7 }
  0x13   : > { %v558_v0 = vmov 0   ;;  %s136_s21 = scalar_select %p135_p10, %s607_s13, 1  ;;  %v234_v9 = vld [vmem:[%s734_s1 + $0x58] sm:$0xff]  ;;  %v562_v10 = vmov 0.0   ;;  %v233_v11 = vld [vmem:[%s734_s1 + $0x50] sm:$0xff]  ;;  %v232_v12 = vld [vmem:[%s734_s1 + $0x48] sm:$0xff] }
  0x14   : > { %494 = vset.pattern.permute.xlu0 %v558_v0  ;;  %495 = vset.pattern.permute.xlu1 %v558_v0  ;;  %v231_v13 = vld [vmem:[%s734_s1 + $0x40] sm:$0xff]  ;;  %v230_v14 = vld [vmem:[%s734_s1 + $0x38] sm:$0xff]  ;;  %v229_v15 = vld [vmem:[%s734_s1 + $0x30] sm:$0xff]  ;;  %vm565_vm0 = vmmov 0   ;;  %vm183_vm1 = vcmask 7168   ;;  %vm185_vm2 = vcmask 15360   ;;  %s696_s30 = scalar_lea.hbm %s735_s2, %s400_s24 }
  0x15   : > { %s395_s22 = sshll.u32 %s136_s21, 3  ;;  %416 = vmatprep.subr.mxu0 %v562_v10  ;;  %v228_v16 = vld [vmem:[%s734_s1 + $0x28] sm:$0xff]  ;;  %v227_v17 = vld [vmem:[%s734_s1 + $0x20] sm:$0xff]  ;;  %v226_v20 = vld [vmem:[%s734_s1 + $0x18] sm:$0xff]  ;;  %440 = vmatprep.mubr.msk.f32.mxu0 %vm565_vm0, %v562_v10  ;;  %vm187_vm3 = vcmask 23552   ;;  %vm189_vm4 = vcmask 31744  }
  0x16   : > { %s138_s25 = scalar_lea.vmem %s733_s0, %s395_s22  ;;  %417 = vmatpush3.msra.mxu0 %v234_v9  ;;  %v225_v21 = vld [vmem:[%s734_s1 + $0x10] sm:$0xff]  ;;  %v224_v22 = vld [vmem:[%s734_s1 + $0x8] sm:$0xff]  ;;  %v223_v26 = vld [vmem:[%s734_s1] sm:$0xff]  ;;  %s569_s21 = smov 85   ;;  %vm211_vm5 = vcmask 138240   ;;  %vm213_vm6 = vcmask 277504  }
  0x17   : > { %v639_v1 = vld [vmem:[%s138_s25] sm:$0xff]  ;;  %418 = vmatprep.subr.mxu0 %v562_v10  ;;  %vm215_vm7 = vcmask 416768   ;;  %vm217_vm8 = vcmask 556032   ;;  %vm219_vm9 = vcmask 695296   ;;  %vm221_vm10 = vcmask 736256   ;;  %s132_s22 = sand.u32 1, %s548_s10  }
  0x18   : > { %149 = vperm.xlu0 %494, %v639_v1   ;;  %v396_v2 = vadd.f32 -0.33333334, %v639_v1  ;;  %v397_v3 = vadd.f32 -0.6666667, %v639_v1  ;;  %v140_v7 = vmul.f32 %v639_v1, %v639_v1  ;;  %419 = vmatpush3.msra.mxu0 %v233_v11  ;;  %vm235_vm11 = vcmask 785408   ;;  %s394_s23 = sshll.u32 %s132_s22, 3 }
  0x19   : > { %420 = vmatprep.subr.mxu0 %v562_v10  ;;  %s134_s25 = scalar_lea.vmem [#allocation2], %s394_s23  ;;  %vm315_vm12 = vcmask 269312   ;;  %s318_s3 = scalar_lea.sflag [#allocation3], %s132_s22 }
  0x1a   : > { %v142_v4 = vmax.f32 %v396_v2, 0.0  ;;  %v145_v5 = vmax.f32 %v397_v3, 0.0  ;;  %421 = vmatpush3.msra.mxu0 %v232_v12  ;;  %s570_s13 = smov [#allocation2]  }
  0x1b   : > { %422 = vmatprep.subr.mxu0 %v562_v10 }
  0x1c   : > { %171 = vrot.lane.b32.xlu0 %v639_v1, %s559_s26  ;;  %v143_v6 = vmul.f32 %v142_v4, %v142_v4  ;;  %v146_v8 = vmul.f32 %v145_v5, %v145_v5  ;;  %423 = vmatpush3.msra.mxu0 %v231_v13 }
  0x1d   : > { %424 = vmatprep.subr.mxu0 %v562_v10 }
  0x1e   : > { %161 = vperm.xlu1 %495, %v143_v6   ;;  %425 = vmatpush3.msra.mxu0 %v230_v14 }
  0x1f   : > { %426 = vmatprep.subr.mxu0 %v562_v10 }
  0x20   : > { %155 = vperm.xlu0 %494, %v140_v7   ;;  %427 = vmatpush3.msra.mxu0 %v229_v15 }
  0x21   : > { %428 = vmatprep.subr.mxu0 %v562_v10 }
  0x22   : > { %167 = vperm.xlu1 %495, %v146_v8   ;;  %429 = vmatpush3.msra.mxu0 %v228_v16 }
  0x23   : > { %430 = vmatprep.subr.mxu0 %v562_v10 }
  0x24   : > { %177 = vrot.lane.b32.xlu0 %v143_v6, %s560_s27  ;;  %431 = vmatpush3.msra.mxu0 %v227_v17  ;;  %s331_s27 = sshll.u32 %s134_s25, 4  ;;  %s332_s27 = int_to_ptr.vmem [resolvable:$true] %s331_s27 }
  0x25   : > { %432 = vmatprep.subr.mxu0 %v562_v10 }
  0x26   : > { %174 = vrot.lane.b32.xlu1 %v140_v7, %s561_s28  ;;  %433 = vmatpush3.msra.mxu0 %v226_v20 }
  0x27   : > { %434 = vmatprep.subr.mxu0 %v562_v10 }
  0x28   : > { %435 = vmatpush3.msra.mxu0 %v225_v21 }
  0x29   : > { %436 = vmatprep.subr.mxu0 %v562_v10 }
  0x2a   : > { %180 = vrot.lane.b32.xlu1 %v146_v8, %s563_s5  ;;  %437 = vmatpush3.msra.mxu0 %v224_v22 }
  0x2b   : > { %438 = vmatprep.subr.mxu0 %v562_v10 }
  0x2c   : > { %439 = vmatpush3.msra.mxu0 %v223_v26 }
  0x93   : > { %v150_v18 = vpop.permute.xlu0 %149 }
  0x94   : > { %v152_v19 = vmul.f32 %v150_v18, %v639_v1 }
  0x96   : > { %192 = vrot.lane.b32.xlu0 %v152_v19, %s564_s4  ;;  %s496_s4 = scalar_lea.vmem %s332_s27, 128 }
  0x97   : > { %v172_v23 = vpop.permute.xlu0 %171  ;;  %p497_p11 = scmp.ne.s32.totalorder %s332_s27, %s496_s4 }
  0x98   : > { %v184_v31 = vsel %vm183_vm1, 1.0, %v172_v23 }
  0x99   : > { %v162_v24 = vpop.permute.xlu1 %161  ;;  %p498_p12 = pnand %p497_p11, %p624_p5 }
  0x9a   : > { %v164_v25 = vmul.f32 %v162_v24, %v639_v1 }
  0x9b   : > { %v156_v27 = vpop.permute.xlu0 %155  ;;  %p499_p13 = pneg %p498_p12 }
  0x9c   : > { %v158_v28 = vmul.f32 %v156_v27, %v639_v1  ;;  %200 = vrot.lane.b32.xlu0 %v164_v25, %s566_s14 }
  0x9d   : > { %v168_v29 = vpop.permute.xlu1 %167 }
  0x9e   : > { %196 = vrot.lane.b32.xlu1 %v158_v28, %s567_s16  ;;  %v170_v30 = vmul.f32 %v168_v29, %v639_v1 }
  0x9f   : > { %v178_v34 = vpop.permute.xlu0 %177 }
  0xa1   : > { %v175_v32 = vpop.permute.xlu1 %174 }
  0xa2   : > { %v186_v33 = vsel %vm185_vm2, %v184_v31, %v175_v32  ;;  %204 = vrot.lane.b32.xlu1 %v170_v30, %s568_s17 }
  0xa3   : > { %v188_v35 = vsel %vm187_vm3, %v186_v33, %v178_v34 }
  0xa5   : > { %v181_v36 = vpop.permute.xlu1 %180 }
  0xa6   : > { %v190_v37 = vsel %vm189_vm4, %v188_v35, %v181_v36 }
  0xa7   : > { %208 = vrot.lane.b32.xlu0 %v190_v37, %s569_s21 }
 0x108   : > { %v193_v38 = vpop.permute.xlu0 %192 }
 0x109   : > { %v212_v40 = vsel %vm211_vm5, %v639_v1, %v193_v38 }
 0x10e   : > { %v201_v41 = vpop.permute.xlu0 %200 }
 0x110   : > { %v197_v39 = vpop.permute.xlu1 %196 }
 0x111   : > { %v214_v42 = vsel %vm213_vm6, %v212_v40, %v197_v39 }
 0x112   : > { %v216_v44 = vsel %vm215_vm7, %v214_v42, %v201_v41 }
 0x114   : > { %v205_v43 = vpop.permute.xlu1 %204 }
 0x115   : > { %v218_v45 = vsel %vm217_vm8, %v216_v44, %v205_v43 }
 0x119   : > { %v209_v46 = vpop.permute.xlu0 %208 }
 0x11a   : > { %v220_v47 = vsel %vm219_vm9, %v218_v45, %v209_v46 }
 0x11b   : > { %v222_v48 = vsel %vm221_vm10, %v220_v47, 0.0 }
 0x11c   : > { %441 = vmatmul.mubr.msk.f32.vlgmr.msra.gmra.mxu0 %vm235_vm11, %v222_v48 }
 0x1dc   : > { %v305_v49 = vpop.f32.mrf.mxu0 }
 0x1dd   : > { %v309_v50 = vmax.f32 %v305_v49, 0.0 }
 0x1de   : > { %v442_v51 = vpop.f32.mrf.mxu0 }
 0x1df   : > { %311 = vrot.lane.b32.xlu1 %v309_v50, %s559_s26  ;;  %s500_s26 = sshll.u32 %s570_s13, 4  ;;  %s501_s26 = int_to_ptr.vmem [resolvable:$false] %s500_s26 }
 0x1e0   : > { %s502_s5 = scalar_lea.vmem %s501_s26, 256  ;;  %p503_p0 = scmp.lt.s32.totalorder %s332_s27, %s501_s26 }
 0x1e1   : > { %p504_p1 = scmp.lt.s32.totalorder %s502_s5, %s496_s4 }
 0x1e3   : > { %p505_p2 = por %p504_p1, %p503_p0 }
 0x1e5   : > { %p506_p3 = pnand %p505_p2, %p499_p13 }
 0x251   : > { %v312_v52 = vpop.permute.xlu1 %311 }
 0x252   : > { %v314_v53 = vsel %vm183_vm1, %v639_v1, %v312_v52 }
 0x253   : > { %316 = vst.msk [vmem:[%s134_s25] sm:$0xff] %vm315_vm12, %v314_v53 }
 0x254   : > { %509 = shalt.err (!%p506_p3)
}
 0x255   : > { %s510_s6 = scalar_lea.hbm %s696_s30, 128  ;;  %s514_s14 = scalar_lea.hbm %s735_s2, 256 }
 0x256   : > { %p511_p4 = scmp.ne.s32.totalorder %s696_s30, %s510_s6  ;;  %p515_p9 = scmp.lt.s32.totalorder %s696_s30, %s735_s2 }
 0x257   : > { %p516_p10 = scmp.lt.s32.totalorder %s514_s14, %s510_s6 }
 0x258   : > { %p512_p7 = pnand %p511_p4, %p624_p5 }
 0x259   : > { %p517_p11 = por %p516_p10, %p515_p9 }
 0x25a   : > { %p513_p8 = pneg %p512_p7 }
 0x25c   : > { %p518_p12 = pnand %p517_p11, %p513_p8 }
 0x25e   : > { %521 = shalt.err (!%p518_p12)
}
 0x25f   : > { %443 = dma.vmem_to_hbm [thread:$0]  (%p624_p5), %s332_s27, 128, %s696_s30, %s318_s3  }
 0x260 PF: > { %p449_p13 = scmp.ge.s32.totalorder %s556_s12, 2  ;;  %s343_s21 = sand.u32 1, %s544_s9  }
 0x261   : > { %s344_s22 = scalar_lea.sflag [#allocation3], %s343_s21 }
 0x262   : > { %p446_p0 = pnand %p449_p13, %p628_p6 }
 0x264   : > { %p447_p1 = pneg %p446_p0 }
 0x266   : > { %539 = dma.done.wait (%p447_p1), %s344_s22, 128  }
 0x267   : > { %541 = vsyncadd (%p447_p1), %s344_s22, 4294967168  ;;  %p12_p2 = scmp.ge.s32.totalorder %s611_s15, 4   ;;  %s738_s9 = smov %s548_s10 }
 0x268   : > { %s739_s10 = smov %s552_s11  ;;  %s740_s11 = smov %s622_s18 }
 0x269   : > { %s741_s12 = smov %s611_s15  ;;  %14 = sbr.rel (!%p12_p2) target bundleno = 3 (0x3), region = 63 }
 0x26e   :  { %349 = vsyncpa [#allocation3], 1 }
 0x26f   :  { %351 = vsyncpa [#allocation3 + $0x1], 1 }

</bundles_post_ra>
